<compile_context>
chip_gen: v7x
topology: tpu7x:2x2x1
jax: 0.10.0
libtpu: 0.0.40
codegen_flags: <defaults>
</compile_context>

<pallas_src>
import functools

import jax
import jax.numpy as jnp
from jax.experimental import pallas as pl
from jax.experimental.pallas import tpu as pltpu

DILATION = 8  # both convs use dilation 8 (padding 8), kernel extent 3


def _lane_shift(a, off):
    """shifted[:, p] = a[:, p + off], zero-filled outside [0, HW).  `off` static."""
    if off == 0:
        return a
    c, hw = a.shape
    pad = jnp.zeros((c, abs(off)), a.dtype)
    if off > 0:
        return jnp.concatenate([a[:, off:], pad], axis=1)
    return jnp.concatenate([pad, a[:, : hw + off]], axis=1)


def _conv_stats_kernel(x_ref, w1c_ref, b1_ref, w2c_ref, b2_ref,
                       mask_l_ref, mask_r_ref, y_ref, stats_ref,
                       *, width, dilation):
    """Per batch: fused conv3x1(dil) + bias + ReLU, fused conv1x3(dil) + bias.

    Also emits per-batch partial BN statistics (per-channel sum / sum-of-squares
    over H*W) into stats_ref (block (1, C, 2)).
    """
    x = x_ref[0]                               # (C, H*W)  -- lane-dense spatial
    d = dilation
    dw = d * width                             # H-tap flat offset (= 128 here)

    # ---- conv3x1: taps along H -> flat shifts by +-D*W (row-exact, no mask) ----
    a1 = jnp.concatenate(
        [_lane_shift(x, -dw), x, _lane_shift(x, dw)], axis=0)       # (3C, HW)
    h1 = jnp.dot(w1c_ref[...], a1, preferred_element_type=jnp.float32)
    h1 = jnp.maximum(h1 + b1_ref[...], 0.0)                         # bias + ReLU

    # ---- conv1x3: taps along W -> flat shifts by +-D, mask cross-row wrap ----
    left = _lane_shift(h1, -d) * mask_l_ref[...]     # valid where w >= D
    right = _lane_shift(h1, d) * mask_r_ref[...]     # valid where w <  W - D
    a2 = jnp.concatenate([left, h1, right], axis=0)                 # (3C, HW)
    y = jnp.dot(w2c_ref[...], a2, preferred_element_type=jnp.float32)
    y = y + b2_ref[...]

    y_ref[0] = y.astype(y_ref.dtype)

    # per-batch partial BN stats (reduced over N in the wrapper)
    s1 = jnp.sum(y, axis=1, keepdims=True)           # (C, 1)
    s2 = jnp.sum(y * y, axis=1, keepdims=True)       # (C, 1)
    stats_ref[0] = jnp.concatenate([s1, s2], axis=1)  # (C, 2)


def _bn_residual_kernel(y_ref, x_ref, scale_ref, shift_ref, o_ref):
    """out = y * scale + shift + x  (scale/shift fold mean/var/gamma/beta)."""
    o_ref[0] = y_ref[0] * scale_ref[...] + shift_ref[...] + x_ref[0]


@functools.partial(jax.jit, static_argnames=("eps",))
def non_bottleneck_1d_r4_forward(x_nchw, w1, b1, w2, b2, gamma, beta, eps=1e-3):
    """Forward pass.  x_nchw: (N,C,H,W) float32.
    w1: (C,C,3,1) conv3x1 weight, b1: (C,)
    w2: (C,C,1,3) conv1x3 weight, b2: (C,)
    gamma/beta: (C,) batch-norm affine params.
    dropprob is taken as 0.0, so the Dropout2d branch is skipped
    (matches `if self.dropout.p != 0` in the PyTorch forward).
    """
    N, C, H, W = x_nchw.shape
    HW = H * W
    D = DILATION
    x_flat = x_nchw.reshape(N, C, HW)                 # contiguous, free reshape

    # fused 3-tap weights: (C_out, 3*C_in); row-block k <-> tap offset (k-1)*D
    w1c = jnp.transpose(w1[:, :, :, 0], (0, 2, 1)).reshape(C, 3 * C)
    w2c = jnp.transpose(w2[:, :, 0, :], (0, 2, 1)).reshape(C, 3 * C)

    # 0/1 masks killing the cross-row wrap of the +-D W-shifts (tiny, built once)
    w_idx = jnp.arange(HW, dtype=jnp.int32) % W
    mask_l = (w_idx >= D).astype(jnp.float32).reshape(1, HW)
    mask_r = (w_idx < W - D).astype(jnp.float32).reshape(1, HW)

    kernel = functools.partial(_conv_stats_kernel, width=W, dilation=D)
    y, stats = pl.pallas_call(
        kernel,
        out_shape=(
            jax.ShapeDtypeStruct((N, C, HW), jnp.float32),
            jax.ShapeDtypeStruct((N, C, 2), jnp.float32),
        ),
        grid_spec=pltpu.PrefetchScalarGridSpec(
            num_scalar_prefetch=0,
            grid=(N,),
            in_specs=[
                pl.BlockSpec((1, C, HW), lambda n: (n, 0, 0)),
                pl.BlockSpec((C, 3 * C), lambda n: (0, 0)),
                pl.BlockSpec((C, 1), lambda n: (0, 0)),
                pl.BlockSpec((C, 3 * C), lambda n: (0, 0)),
                pl.BlockSpec((C, 1), lambda n: (0, 0)),
                pl.BlockSpec((1, HW), lambda n: (0, 0)),
                pl.BlockSpec((1, HW), lambda n: (0, 0)),
            ],
            out_specs=[
                pl.BlockSpec((1, C, HW), lambda n: (n, 0, 0)),
                pl.BlockSpec((1, C, 2), lambda n: (n, 0, 0)),
            ],
        ),
        compiler_params=pltpu.CompilerParams(
            dimension_semantics=("parallel",)),        # per-batch partial stats
    )(x_flat, w1c, b1.reshape(C, 1), w2c, b2.reshape(C, 1), mask_l, mask_r)

    # tiny (C,)-sized glue: fold batch stats + affine into scale/shift
    count = N * HW
    ssum = jnp.sum(stats, axis=0)                      # (C, 2)
    mean = ssum[:, 0] / count
    # NOTE: E[x^2]-E[x]^2 in f32; fine at these sizes (training-mode biased var).
    var = ssum[:, 1] / count - mean * mean
    inv = gamma * jax.lax.rsqrt(var + eps)
    scale = inv.reshape(C, 1)
    shift = (beta - mean * inv).reshape(C, 1)

    out = pl.pallas_call(
        _bn_residual_kernel,
        out_shape=jax.ShapeDtypeStruct((N, C, HW), jnp.float32),
        grid_spec=pltpu.PrefetchScalarGridSpec(
            num_scalar_prefetch=0,
            grid=(N,),
            in_specs=[
                pl.BlockSpec((1, C, HW), lambda n: (n, 0, 0)),
                pl.BlockSpec((1, C, HW), lambda n: (n, 0, 0)),
                pl.BlockSpec((C, 1), lambda n: (0, 0)),
                pl.BlockSpec((C, 1), lambda n: (0, 0)),
            ],
            out_specs=pl.BlockSpec((1, C, HW), lambda n: (n, 0, 0)),
        ),
        input_output_aliases={0: 0},                   # write result in place of y
        compiler_params=pltpu.CompilerParams(
            dimension_semantics=("parallel",)),
    )(y, x_flat, scale, shift)

    return out.reshape(N, C, H, W)


def _reference(x, w1, b1, w2, b2, gamma, beta, eps=1e-3):
    """Pure-JAX reference mirroring the PyTorch forward (training-mode BN, p=0)."""
    dn = ("NCHW", "OIHW", "NCHW")
    o = jax.lax.conv_general_dilated(
        x, w1, (1, 1), ((8, 8), (0, 0)), rhs_dilation=(8, 1),
        dimension_numbers=dn) + b1.reshape(1, -1, 1, 1)
    o = jax.nn.relu(o)
    o = jax.lax.conv_general_dilated(
        o, w2, (1, 1), ((0, 0), (8, 8)), rhs_dilation=(1, 8),
        dimension_numbers=dn) + b2.reshape(1, -1, 1, 1)
    mean = o.mean(axis=(0, 2, 3), keepdims=True)
    var = ((o - mean) ** 2).mean(axis=(0, 2, 3), keepdims=True)
    o = (o - mean) * jax.lax.rsqrt(var + eps)
    o = o * gamma.reshape(1, -1, 1, 1) + beta.reshape(1, -1, 1, 1)
    # TODO(synk): Dropout2d with nonzero p would need pltpu.prng_* channel masks; p=0 here.
    return o + x


if __name__ == "__main__":
    N, C, H, W = 2, 8, 16, 16
    key = jax.random.PRNGKey(0)
    kx, k1, kb1, k2, kb2 = jax.random.split(key, 5)

    x = jax.random.normal(kx, (N, C, H, W), jnp.float32)
    # deterministic synthetic parameters (shapes from the module's __init__)
    w1 = 0.1 * jax.random.normal(k1, (C, C, 3, 1), jnp.float32)   # conv3x1.weight
    b1 = 0.1 * jax.random.normal(kb1, (C,), jnp.float32)          # conv3x1.bias
    w2 = 0.1 * jax.random.normal(k2, (C, C, 1, 3), jnp.float32)   # conv1x3.weight
    b2 = 0.1 * jax.random.normal(kb2, (C,), jnp.float32)          # conv1x3.bias
    gamma = jnp.ones((C,), jnp.float32)                           # bn.weight
    beta = jnp.zeros((C,), jnp.float32)                           # bn.bias

    out = non_bottleneck_1d_r4_forward(x, w1, b1, w2, b2, gamma, beta)
    out = jax.block_until_ready(out)

    ref = _reference(x, w1, b1, w2, b2, gamma, beta)
    assert out.shape == (N, C, H, W)
    assert jnp.allclose(out, ref, rtol=1e-4, atol=1e-4), float(
        jnp.max(jnp.abs(out - ref)))

    print("KERNEL_OK")
</pallas_src>

<mosaic_0001>
module attributes {stable_mosaic.version = 11 : i64} {
  func.func @_conv_stats_kernel(%arg0: i32, %arg1: memref<1x8x256xf32, #tpu.memory_space<vmem>>, %arg2: memref<8x24xf32, #tpu.memory_space<vmem>>, %arg3: memref<8x1xf32, #tpu.memory_space<vmem>>, %arg4: memref<8x24xf32, #tpu.memory_space<vmem>>, %arg5: memref<8x1xf32, #tpu.memory_space<vmem>>, %arg6: memref<1x256xf32, #tpu.memory_space<vmem>>, %arg7: memref<1x256xf32, #tpu.memory_space<vmem>>, %arg8: memref<1x8x256xf32, #tpu.memory_space<vmem>>, %arg9: memref<1x8x2xf32, #tpu.memory_space<vmem>>) attributes {dimension_semantics = [#tpu.dimension_semantics<parallel>], iteration_bounds = array<i64: 2>, scalar_prefetch = 0 : i64, scratch_operands = 0 : i64, tpu.core_type = #tpu.core_type<tc>, window_params = [{transform_indices = @transform_0, window_bounds = array<i64: 1, 8, 256>}, {pipeline_mode = #tpu.pipeline_mode<synchronous>, transform_indices = @transform_1, window_bounds = array<i64: 8, 24>}, {pipeline_mode = #tpu.pipeline_mode<synchronous>, transform_indices = @transform_2, window_bounds = array<i64: 8, 1>}, {pipeline_mode = #tpu.pipeline_mode<synchronous>, transform_indices = @transform_3, window_bounds = array<i64: 8, 24>}, {pipeline_mode = #tpu.pipeline_mode<synchronous>, transform_indices = @transform_4, window_bounds = array<i64: 8, 1>}, {pipeline_mode = #tpu.pipeline_mode<synchronous>, transform_indices = @transform_5, window_bounds = array<i64: 1, 256>}, {pipeline_mode = #tpu.pipeline_mode<synchronous>, transform_indices = @transform_6, window_bounds = array<i64: 1, 256>}, {transform_indices = @transform_7, window_bounds = array<i64: 1, 8, 256>}, {transform_indices = @transform_8, window_bounds = array<i64: 1, 8, 2>}]} {
    %c0 = arith.constant 0 : index
    %c0_0 = arith.constant 0 : index
    %c0_1 = arith.constant 0 : index
    %0 = vector.load %arg1[%c0, %c0_0, %c0_1] : memref<1x8x256xf32, #tpu.memory_space<vmem>>, vector<1x8x256xf32>
    %1 = vector.shape_cast %0 : vector<1x8x256xf32> to vector<8x256xf32>
    %cst = arith.constant 0.000000e+00 : f32
    %2 = vector.broadcast %cst : f32 to vector<8x128xf32>
    %3 = vector.extract_strided_slice %1 {offsets = [0, 0], sizes = [8, 128], strides = [1, 1]} : vector<8x256xf32> to vector<8x128xf32>
    %4 = tpu.concatenate %2, %3 in 1 : vector<8x128xf32>, vector<8x128xf32> -> vector<8x256xf32>
    %cst_2 = arith.constant 0.000000e+00 : f32
    %5 = vector.broadcast %cst_2 : f32 to vector<8x128xf32>
    %6 = vector.extract_strided_slice %1 {offsets = [0, 128], sizes = [8, 128], strides = [1, 1]} : vector<8x256xf32> to vector<8x128xf32>
    %7 = tpu.concatenate %6, %5 in 1 : vector<8x128xf32>, vector<8x128xf32> -> vector<8x256xf32>
    %8 = tpu.concatenate %4, %1, %7 in 0 : vector<8x256xf32>, vector<8x256xf32>, vector<8x256xf32> -> vector<24x256xf32>
    %c0_3 = arith.constant 0 : index
    %c0_4 = arith.constant 0 : index
    %9 = vector.load %arg2[%c0_3, %c0_4] : memref<8x24xf32, #tpu.memory_space<vmem>>, vector<8x24xf32>
    %cst_5 = arith.constant dense<0.000000e+00> : vector<8x256xf32>
    %10 = tpu.matmul %9, %8, %cst_5 {dimension_numbers = #tpu.dot_dimension_numbers<[1], [0], [0], [1], [0, 0, 1, 1], [], []>} : vector<8x24xf32>, vector<24x256xf32>, vector<8x256xf32> -> vector<8x256xf32>
    %c0_6 = arith.constant 0 : index
    %c0_7 = arith.constant 0 : index
    %11 = vector.load %arg3[%c0_6, %c0_7] : memref<8x1xf32, #tpu.memory_space<vmem>>, vector<8x1xf32>
    %12 = vector.broadcast %11 : vector<8x1xf32> to vector<8x256xf32>
    %13 = arith.addf %10, %12 : vector<8x256xf32>
    %cst_8 = arith.constant 0.000000e+00 : f32
    %14 = vector.broadcast %cst_8 : f32 to vector<8x256xf32>
    %15 = arith.maximumf %13, %14 : vector<8x256xf32>
    %cst_9 = arith.constant 0.000000e+00 : f32
    %16 = vector.broadcast %cst_9 : f32 to vector<8x8xf32>
    %17 = vector.extract_strided_slice %15 {offsets = [0, 0], sizes = [8, 248], strides = [1, 1]} : vector<8x256xf32> to vector<8x248xf32>
    %18 = tpu.concatenate %16, %17 in 1 : vector<8x8xf32>, vector<8x248xf32> -> vector<8x256xf32>
    %c0_10 = arith.constant 0 : index
    %c0_11 = arith.constant 0 : index
    %19 = vector.load %arg6[%c0_10, %c0_11] : memref<1x256xf32, #tpu.memory_space<vmem>>, vector<1x256xf32>
    %20 = vector.broadcast %19 : vector<1x256xf32> to vector<8x256xf32>
    %21 = arith.mulf %18, %20 : vector<8x256xf32>
    %cst_12 = arith.constant 0.000000e+00 : f32
    %22 = vector.broadcast %cst_12 : f32 to vector<8x8xf32>
    %23 = vector.extract_strided_slice %15 {offsets = [0, 8], sizes = [8, 248], strides = [1, 1]} : vector<8x256xf32> to vector<8x248xf32>
    %24 = tpu.concatenate %23, %22 in 1 : vector<8x248xf32>, vector<8x8xf32> -> vector<8x256xf32>
    %c0_13 = arith.constant 0 : index
    %c0_14 = arith.constant 0 : index
    %25 = vector.load %arg7[%c0_13, %c0_14] : memref<1x256xf32, #tpu.memory_space<vmem>>, vector<1x256xf32>
    %26 = vector.broadcast %25 : vector<1x256xf32> to vector<8x256xf32>
    %27 = arith.mulf %24, %26 : vector<8x256xf32>
    %28 = tpu.concatenate %21, %15, %27 in 0 : vector<8x256xf32>, vector<8x256xf32>, vector<8x256xf32> -> vector<24x256xf32>
    %c0_15 = arith.constant 0 : index
    %c0_16 = arith.constant 0 : index
    %29 = vector.load %arg4[%c0_15, %c0_16] : memref<8x24xf32, #tpu.memory_space<vmem>>, vector<8x24xf32>
    %cst_17 = arith.constant dense<0.000000e+00> : vector<8x256xf32>
    %30 = tpu.matmul %29, %28, %cst_17 {dimension_numbers = #tpu.dot_dimension_numbers<[1], [0], [0], [1], [0, 0, 1, 1], [], []>} : vector<8x24xf32>, vector<24x256xf32>, vector<8x256xf32> -> vector<8x256xf32>
    %c0_18 = arith.constant 0 : index
    %c0_19 = arith.constant 0 : index
    %31 = vector.load %arg5[%c0_18, %c0_19] : memref<8x1xf32, #tpu.memory_space<vmem>>, vector<8x1xf32>
    %32 = vector.broadcast %31 : vector<8x1xf32> to vector<8x256xf32>
    %33 = arith.addf %30, %32 : vector<8x256xf32>
    %c0_20 = arith.constant 0 : index
    %c0_21 = arith.constant 0 : index
    %c0_22 = arith.constant 0 : index
    %34 = vector.load %arg8[%c0_20, %c0_21, %c0_22] : memref<1x8x256xf32, #tpu.memory_space<vmem>>, vector<1x8x256xf32>
    %35 = vector.shape_cast %34 : vector<1x8x256xf32> to vector<8x256xf32>
    %36 = vector.shape_cast %33 : vector<8x256xf32> to vector<1x8x256xf32>
    tpu.vector_store %arg8[%c0_20, %c0_21, %c0_22], %36 {strides = array<i32>} : memref<1x8x256xf32, #tpu.memory_space<vmem>>, vector<1x8x256xf32>,
    %cst_23 = arith.constant dense<0.000000e+00> : vector<8xf32>
    %37 = vector.multi_reduction <add>, %33, %cst_23 [1] : vector<8x256xf32> to vector<8xf32>
    %38 = vector.shape_cast %37 : vector<8xf32> to vector<8x1xf32>
    %39 = arith.mulf %33, %33 : vector<8x256xf32>
    %cst_24 = arith.constant dense<0.000000e+00> : vector<8xf32>
    %40 = vector.multi_reduction <add>, %39, %cst_24 [1] : vector<8x256xf32> to vector<8xf32>
    %41 = vector.shape_cast %40 : vector<8xf32> to vector<8x1xf32>
    %42 = tpu.concatenate %38, %41 in 1 : vector<8x1xf32>, vector<8x1xf32> -> vector<8x2xf32>
    %c0_25 = arith.constant 0 : index
    %c0_26 = arith.constant 0 : index
    %c0_27 = arith.constant 0 : index
    %43 = vector.load %arg9[%c0_25, %c0_26, %c0_27] : memref<1x8x2xf32, #tpu.memory_space<vmem>>, vector<1x8x2xf32>
    %44 = vector.shape_cast %43 : vector<1x8x2xf32> to vector<8x2xf32>
    %45 = vector.shape_cast %42 : vector<8x2xf32> to vector<1x8x2xf32>
    tpu.vector_store %arg9[%c0_25, %c0_26, %c0_27], %45 {strides = array<i32>} : memref<1x8x2xf32, #tpu.memory_space<vmem>>, vector<1x8x2xf32>,
    return
  }
  func.func @transform_0(%arg0: i32) -> (i32, i32, i32) {
    %c0_i32 = arith.constant 0 : i32
    %c0_i32_0 = arith.constant 0 : i32
    %c0_i32_1 = arith.constant 0 : i32
    return %arg0, %c0_i32, %c0_i32_0 : i32, i32, i32
  }
  func.func @transform_1(%arg0: i32) -> (i32, i32) {
    %c0_i32 = arith.constant 0 : i32
    %c0_i32_0 = arith.constant 0 : i32
    %c0_i32_1 = arith.constant 0 : i32
    return %c0_i32, %c0_i32_0 : i32, i32
  }
  func.func @transform_2(%arg0: i32) -> (i32, i32) {
    %c0_i32 = arith.constant 0 : i32
    %c0_i32_0 = arith.constant 0 : i32
    %c0_i32_1 = arith.constant 0 : i32
    return %c0_i32, %c0_i32_0 : i32, i32
  }
  func.func @transform_3(%arg0: i32) -> (i32, i32) {
    %c0_i32 = arith.constant 0 : i32
    %c0_i32_0 = arith.constant 0 : i32
    %c0_i32_1 = arith.constant 0 : i32
    return %c0_i32, %c0_i32_0 : i32, i32
  }
  func.func @transform_4(%arg0: i32) -> (i32, i32) {
    %c0_i32 = arith.constant 0 : i32
    %c0_i32_0 = arith.constant 0 : i32
    %c0_i32_1 = arith.constant 0 : i32
    return %c0_i32, %c0_i32_0 : i32, i32
  }
  func.func @transform_5(%arg0: i32) -> (i32, i32) {
    %c0_i32 = arith.constant 0 : i32
    %c0_i32_0 = arith.constant 0 : i32
    %c0_i32_1 = arith.constant 0 : i32
    return %c0_i32, %c0_i32_0 : i32, i32
  }
  func.func @transform_6(%arg0: i32) -> (i32, i32) {
    %c0_i32 = arith.constant 0 : i32
    %c0_i32_0 = arith.constant 0 : i32
    %c0_i32_1 = arith.constant 0 : i32
    return %c0_i32, %c0_i32_0 : i32, i32
  }
  func.func @transform_7(%arg0: i32) -> (i32, i32, i32) {
    %c0_i32 = arith.constant 0 : i32
    %c0_i32_0 = arith.constant 0 : i32
    %c0_i32_1 = arith.constant 0 : i32
    return %arg0, %c0_i32, %c0_i32_0 : i32, i32, i32
  }
  func.func @transform_8(%arg0: i32) -> (i32, i32, i32) {
    %c0_i32 = arith.constant 0 : i32
    %c0_i32_0 = arith.constant 0 : i32
    %c0_i32_1 = arith.constant 0 : i32
    return %arg0, %c0_i32, %c0_i32_0 : i32, i32, i32
  }
}

module attributes {stable_mosaic.version = 11 : i64} {
  func.func @_bn_residual_kernel(%arg0: i32, %arg1: memref<1x8x256xf32, #tpu.memory_space<vmem>>, %arg2: memref<1x8x256xf32, #tpu.memory_space<vmem>>, %arg3: memref<8x1xf32, #tpu.memory_space<vmem>>, %arg4: memref<8x1xf32, #tpu.memory_space<vmem>>, %arg5: memref<1x8x256xf32, #tpu.memory_space<vmem>>) attributes {dimension_semantics = [#tpu.dimension_semantics<parallel>], iteration_bounds = array<i64: 2>, scalar_prefetch = 0 : i64, scratch_operands = 0 : i64, tpu.core_type = #tpu.core_type<tc>, window_params = [{transform_indices = @transform_0, window_bounds = array<i64: 1, 8, 256>}, {transform_indices = @transform_1, window_bounds = array<i64: 1, 8, 256>}, {pipeline_mode = #tpu.pipeline_mode<synchronous>, transform_indices = @transform_2, window_bounds = array<i64: 8, 1>}, {pipeline_mode = #tpu.pipeline_mode<synchronous>, transform_indices = @transform_3, window_bounds = array<i64: 8, 1>}, {transform_indices = @transform_4, window_bounds = array<i64: 1, 8, 256>}]} {
    %c0 = arith.constant 0 : index
    %c0_0 = arith.constant 0 : index
    %c0_1 = arith.constant 0 : index
    %0 = vector.load %arg1[%c0, %c0_0, %c0_1] : memref<1x8x256xf32, #tpu.memory_space<vmem>>, vector<1x8x256xf32>
    %1 = vector.shape_cast %0 : vector<1x8x256xf32> to vector<8x256xf32>
    %c0_2 = arith.constant 0 : index
    %c0_3 = arith.constant 0 : index
    %2 = vector.load %arg3[%c0_2, %c0_3] : memref<8x1xf32, #tpu.memory_space<vmem>>, vector<8x1xf32>
    %3 = vector.broadcast %2 : vector<8x1xf32> to vector<8x256xf32>
    %4 = arith.mulf %1, %3 : vector<8x256xf32>
    %c0_4 = arith.constant 0 : index
    %c0_5 = arith.constant 0 : index
    %5 = vector.load %arg4[%c0_4, %c0_5] : memref<8x1xf32, #tpu.memory_space<vmem>>, vector<8x1xf32>
    %6 = vector.broadcast %5 : vector<8x1xf32> to vector<8x256xf32>
    %7 = arith.addf %4, %6 : vector<8x256xf32>
    %c0_6 = arith.constant 0 : index
    %c0_7 = arith.constant 0 : index
    %c0_8 = arith.constant 0 : index
    %8 = vector.load %arg2[%c0_6, %c0_7, %c0_8] : memref<1x8x256xf32, #tpu.memory_space<vmem>>, vector<1x8x256xf32>
    %9 = vector.shape_cast %8 : vector<1x8x256xf32> to vector<8x256xf32>
    %10 = arith.addf %7, %9 : vector<8x256xf32>
    %c0_9 = arith.constant 0 : index
    %c0_10 = arith.constant 0 : index
    %c0_11 = arith.constant 0 : index
    %11 = vector.load %arg5[%c0_9, %c0_10, %c0_11] : memref<1x8x256xf32, #tpu.memory_space<vmem>>, vector<1x8x256xf32>
    %12 = vector.shape_cast %11 : vector<1x8x256xf32> to vector<8x256xf32>
    %13 = vector.shape_cast %10 : vector<8x256xf32> to vector<1x8x256xf32>
    tpu.vector_store %arg5[%c0_9, %c0_10, %c0_11], %13 {strides = array<i32>} : memref<1x8x256xf32, #tpu.memory_space<vmem>>, vector<1x8x256xf32>,
    return
  }
  func.func @transform_0(%arg0: i32) -> (i32, i32, i32) {
    %c0_i32 = arith.constant 0 : i32
    %c0_i32_0 = arith.constant 0 : i32
    %c0_i32_1 = arith.constant 0 : i32
    return %arg0, %c0_i32, %c0_i32_0 : i32, i32, i32
  }
  func.func @transform_1(%arg0: i32) -> (i32, i32, i32) {
    %c0_i32 = arith.constant 0 : i32
    %c0_i32_0 = arith.constant 0 : i32
    %c0_i32_1 = arith.constant 0 : i32
    return %arg0, %c0_i32, %c0_i32_0 : i32, i32, i32
  }
  func.func @transform_2(%arg0: i32) -> (i32, i32) {
    %c0_i32 = arith.constant 0 : i32
    %c0_i32_0 = arith.constant 0 : i32
    %c0_i32_1 = arith.constant 0 : i32
    return %c0_i32, %c0_i32_0 : i32, i32
  }
  func.func @transform_3(%arg0: i32) -> (i32, i32) {
    %c0_i32 = arith.constant 0 : i32
    %c0_i32_0 = arith.constant 0 : i32
    %c0_i32_1 = arith.constant 0 : i32
    return %c0_i32, %c0_i32_0 : i32, i32
  }
  func.func @transform_4(%arg0: i32) -> (i32, i32, i32) {
    %c0_i32 = arith.constant 0 : i32
    %c0_i32_0 = arith.constant 0 : i32
    %c0_i32_1 = arith.constant 0 : i32
    return %arg0, %c0_i32, %c0_i32_0 : i32, i32, i32
  }
}

</mosaic_0001>

<bundles_post_ra>
// kernel: non_bottleneck_1d_r4_forward.3
= control target key start
LH: loop header
LB: loop body
LE: loop exit
PB: predicated region body
PF: predicated region fallthrough
CT: control target
= control target key end

     0   :  { %s369_s15 = smov 0   ;;  %s395_s0 = inlined_call_operand.vmem [shape: f32[2,8,256], index: 0, kind: input, shape index: {}, may-alias: {0,4}]   ;;  %s396_s1 = inlined_call_operand.vmem [shape: f32[2,8,256], index: 1, kind: input, shape index: {}]   ;;  %s397_s2 = inlined_call_operand.vmem [shape: f32[8,1], index: 2, kind: input, shape index: {}]   ;;  %s398_s3 = inlined_call_operand.vmem [shape: f32[8,1], index: 3, kind: input, shape index: {}]   ;;  %s399_s4 = inlined_call_operand.vmem [shape: f32[2,8,256], index: 4, kind: output, shape index: {}, may-alias: {0,4}]  }
   0x1 LB: > { %s309_s16 = sadd.s32 4294967295, %s341_s15   ;;  %p313_p0 = scmp.ge.s32.totalorder %s341_s15, 1  ;;  %s341_s15 = sphi %s369_s15, %s14_s15  }
   0x2   : > { %p172_p1 = scmp.lt.s32.totalorder %s341_s15, 3 }
   0x4   : > { %p173_p2 = pnand %p313_p0, %p172_p1 }
   0x5   : > { %v220_v0 = vld [vmem:[%s397_s2] sm:$0xff] (!%p173_p2)  ;;  %v343_v1 = vmov (!%p173_p2), 0   ;;  %p203_p3 = scmp.lt.s32.totalorder (!%p173_p2), %s309_s16, 1 }
   0x6   : > { %176 = sbr.rel (%p173_p2) target bundleno = 144 (0x90), region = 36  ;;  %334 = vset.pattern.permute.xlu0 (!%p173_p2), %v343_v1  ;;  %v228_v2 = vld [vmem:[%s398_s3] sm:$0xff] (!%p173_p2) }
   0x7   : > { %223 = vperm.xlu0 (!%p173_p2), %334, %v220_v0  }
   0xb   : > { %231 = vperm.xlu0 (!%p173_p2), %334, %v228_v2  }
   0xd   : > { %s401_s16 = smov (!%p203_p3, %s309_s16), 1 }
   0xe   : > { %s322_s21 = sshll.u32 %s401_s16, 4 }
   0xf   : > { %s207_s24 = scalar_lea.vmem %s395_s0, %s322_s21  ;;  %s212_s27 = scalar_lea.vmem %s396_s1, %s322_s21 }
  0x10   : > { %v218_v4 = vld [vmem:[%s207_s24] sm:$0xff]  ;;  %v219_v5 = vld [vmem:[%s207_s24 + $0x8] sm:$0xff]  ;;  %s217_s30 = scalar_lea.vmem %s399_s4, %s322_s21 }
  0x11   : > { %v236_v9 = vld [vmem:[%s212_s27] sm:$0xff]  ;;  %v237_v10 = vld [vmem:[%s212_s27 + $0x8] sm:$0xff] }
  0x86   : > { %v224_v3 = vpop.permute.xlu0 %223 }
  0x87   : > { %v226_v6 = vmul.f32 %v224_v3, %v218_v4  ;;  %v227_v7 = vmul.f32 %v224_v3, %v219_v5 }
  0x8a   : > { %v232_v8 = vpop.permute.xlu0 %231 }
  0x8b   : > { %v234_v11 = vadd.f32 %v232_v8, %v226_v6  ;;  %v235_v12 = vadd.f32 %v232_v8, %v227_v7 }
  0x8d   : > { %v238_v13 = vadd.f32 %v236_v9, %v234_v11  ;;  %v239_v14 = vadd.f32 %v237_v10, %v235_v12 }
  0x8f   : > { %240 = vst [vmem:[%s217_s30] sm:$0xff] %v238_v13  ;;  %241 = vst [vmem:[%s217_s30 + $0x8] sm:$0xff] %v239_v14 }
  0x90 PF: > { %s14_s15 = sadd.s32 1, %s341_s15  }
  0x91   : > { %p11_p4 = scmp.ge.s32.totalorder %s14_s15, 4  }
  0x93   :  { %13 = sbr.rel (!%p11_p4) target bundleno = 1 (0x1), region = 69 }

// kernel: non_bottleneck_1d_r4_forward.2
= control target key start
LH: loop header
LB: loop body
LE: loop exit
PB: predicated region body
PF: predicated region fallthrough
CT: control target
= control target key end

     0   :  { %s727_s27 = smov 0   ;;  %s775_s0 = inlined_call_operand.vmem [shape: f32[2,8,256], index: 0, kind: input, shape index: {}]   ;;  %s776_s1 = inlined_call_operand.vmem [shape: f32[8,24], index: 1, kind: input, shape index: {}]   ;;  %s777_s2 = inlined_call_operand.vmem [shape: f32[8,1], index: 2, kind: input, shape index: {}]   ;;  %s778_s3 = inlined_call_operand.vmem [shape: f32[8,24], index: 3, kind: input, shape index: {}]   ;;  %s779_s4 = inlined_call_operand.vmem [shape: f32[8,1], index: 4, kind: input, shape index: {}]   ;;  %s780_s5 = inlined_call_operand.vmem [shape: f32[1,256], index: 5, kind: input, shape index: {}]   ;;  %s781_s6 = inlined_call_operand.vmem [shape: f32[1,256], index: 6, kind: input, shape index: {}]   ;;  %s782_s7 = inlined_call_operand.vmem [shape: f32[2,8,256], index: 7, kind: output, shape index: {0}]   ;;  %s783_s8 = inlined_call_operand.vmem [shape: f32[2,8,2], index: 8, kind: output, shape index: {1}]  }
   0x1 LB: > { %s632_s28 = sadd.s32 4294967295, %s676_s27   ;;  %p636_p0 = scmp.ge.s32.totalorder %s676_s27, 1  ;;  %s676_s27 = sphi %s727_s27, %s19_s27  }
   0x2   : > { %p265_p1 = scmp.lt.s32.totalorder %s676_s27, 3 }
   0x4   : > { %p266_p2 = pnand %p636_p0, %p265_p1 }
   0x5   : > { %p303_p3 = scmp.lt.s32.totalorder (!%p266_p2), %s632_s28, 1  ;;  %v320_v0 = vld [vmem:[%s777_s2] sm:$0xff] (!%p266_p2)  ;;  %v678_v1 = vmov (!%p266_p2), 0.0   ;;  %v679_v2 = vmov (!%p266_p2), 0   ;;  %vm326_vm0 = vcmask (!%p266_p2), 195584   ;;  %s680_s15 = smov (!%p266_p2), 8   ;;  %v416_v16 = vlaneseq (!%p266_p2) }
   0x6   : > { %269 = sbr.rel (%p266_p2) target bundleno = 731 (0x2db), region = 48  ;;  %394 = vmatprep.mubr.f32.mxu0 (!%p266_p2), %v678_v1  ;;  %668 = vset.pattern.permute.xlu0 (!%p266_p2), %v679_v2  ;;  %v319_v7 = vld [vmem:[%s776_s1] sm:$0xff] (!%p266_p2)  ;;  %s681_s16 = smov (!%p266_p2), 120   ;;  %vm409_vm1 = vcmask (!%p266_p2), 64512   ;;  %vm432_vm2 = vcmask (!%p266_p2), 982016   ;;  %vm542_vm3 = vcmask (!%p266_p2), 7168  }
   0x7   : > { %323 = vperm.xlu0 (!%p266_p2), %668, %v320_v0   ;;  %525 = vmatprep.mubr.f32.mxu1 (!%p266_p2), %v678_v1  ;;  %v452_v15 = vld [vmem:[%s779_s4] sm:$0xff] (!%p266_p2)  ;;  %v417_v17 = vshrl.u32 (!%p266_p2), %v416_v16, 7  ;;  %vm544_vm4 = vcmask (!%p266_p2), 15360  }
   0x8   : > { %669 = vset.pattern.permute.xlu1 (!%p266_p2), %v679_v2  ;;  %v414_v19 = vld [vmem:[%s780_s5] sm:$0x3] (!%p266_p2) }
   0x9   : > { %v418_v18 = vsub.s32 (!%p266_p2), 0, %v417_v17  ;;  %v422_v20 = vsub.s32 (!%p266_p2), 1, %v417_v17  ;;  %v437_v24 = vld [vmem:[%s781_s6] sm:$0x3] (!%p266_p2) }
   0xa   : > { %v451_v40 = vld [vmem:[%s778_s3] sm:$0xff] (!%p266_p2) }
   0xb   : > { %v419_v21 = vrot.slane (!%p266_p2), %v414_v19, %v418_v18  ;;  %v423_v22 = vrot.slane (!%p266_p2), %v414_v19, %v422_v20  ;;  %v446_v29 = vrot.slane (!%p266_p2), %v437_v24, %v422_v20  ;;  %v442_v34 = vrot.slane (!%p266_p2), %v437_v24, %v418_v18 }
   0xd   : > { %s785_s28 = smov (!%p303_p3, %s632_s28), 1 }
   0xe   : > { %s646_s9 = sshll.u32 %s785_s28, 4  ;;  %s641_s30 = sshll.u32 %s785_s28, 3 }
   0xf   : > { %s307_s12 = scalar_lea.vmem %s775_s0, %s646_s9  ;;  %s312_s29 = scalar_lea.vmem %s782_s7, %s646_s9 }
  0x10   : > { %v317_v3 = vld [vmem:[%s307_s12] sm:$0xff]  ;;  %v318_v4 = vld [vmem:[%s307_s12 + $0x8] sm:$0xff]  ;;  %s316_s12 = scalar_lea.vmem %s783_s8, %s641_s30 }
  0x11   : > { %v648_v5 = vpack.c.bf16 %v318_v4, %v317_v3  ;;  %v650_v6 = vpack.c.bf16 %v317_v3, %v678_v1 }
  0x13   : > { %649 = vmatprep.subr.bf16.mxu0 %v648_v5 }
  0x14   : > { %651 = vmatpush1.bf16.msra.mxu0 %v650_v6 }
  0x15   : > { %334 = vmatprep.subr.mxu0 %v678_v1 }
  0x18   : > { %335 = vmatpush1.msra.mxu0 %v318_v4 }
  0x19   : > { %642 = vmatmul.mubr.msk.f32.vlgmr.msra.gmra.mrb[0].mxu0 %vm326_vm0, %v319_v7 }
  0x86   : > { %v324_v8 = vpop.permute.xlu0 %323 }
  0xec   : > { %v396_v9 = vpop.f32.mrb[0].mxu0 }
  0xed   : > { %v397_v10 = vadd.f32 %v396_v9, %v324_v8  ;;  %v398_v11 = vpop.f32.mrb[1].mxu0 }
  0xee   : > { %v399_v12 = vadd.f32 %v398_v11, %v324_v8 }
  0xef   : > { %v401_v13 = vmax.f32 %v397_v10, 0.0 }
  0xf0   : > { %v402_v14 = vmax.f32 %v399_v12, 0.0 }
  0xf1   : > { %405 = vrot.lane.b32.xlu0 %v401_v13, %s680_s15 }
  0xf2   : > { %407 = vrot.lane.b32.xlu1 %v402_v14, %s680_s15 }
  0xf5   : > { %428 = vrot.lane.b32.xlu0 %v401_v13, %s681_s16 }
  0xf6   : > { %430 = vrot.lane.b32.xlu1 %v402_v14, %s681_s16 }
  0xfa   : > { %455 = vperm.xlu1 %669, %v452_v15  }
 0x163   : > { %v406_v23 = vpop.permute.xlu0 %405 }
 0x164   : > { %v413_v25 = vsel %vm409_vm1, 0.0, %v406_v23  ;;  %v408_v26 = vpop.permute.xlu1 %407 }
 0x165   : > { %v426_v27 = vmul.f32 %v419_v21, %v413_v25  ;;  %v410_v28 = vsel %vm409_vm1, %v406_v23, %v408_v26 }
 0x166   : > { %v427_v30 = vmul.f32 %v423_v22, %v410_v28 }
 0x167   : > { %v429_v31 = vpop.permute.xlu0 %428  ;;  %v654_v36 = vpack.c.bf16 %v401_v13, %v426_v27 }
 0x168   : > { %v431_v32 = vpop.permute.xlu1 %430  ;;  %v652_v33 = vpack.c.bf16 %v402_v14, %v427_v30 }
 0x169   : > { %v436_v35 = vsel %vm432_vm2, %v431_v32, 0.0  ;;  %v433_v37 = vsel %vm432_vm2, %v429_v31, %v431_v32 }
 0x16a   : > { %v450_v38 = vmul.f32 %v446_v29, %v436_v35  ;;  %653 = vmatprep.subr.bf16.mxu1 %v652_v33  ;;  %v449_v39 = vmul.f32 %v442_v34, %v433_v37 }
 0x16b   : > { %655 = vmatpush1.bf16.msra.mxu1 %v654_v36 }
 0x16c   : > { %465 = vmatprep.subr.mxu1 %v450_v38 }
 0x16f   : > { %466 = vmatpush1.msra.mxu1 %v449_v39 }
 0x170   : > { %643 = vmatmul.mubr.msk.f32.vlgmr.msra.gmra.mrb[0].mxu1 %vm326_vm0, %v451_v40 }
 0x179   : > { %v456_v41 = vpop.permute.xlu1 %455 }
 0x243   : > { %v527_v42 = vpop.f32.mrb[0].mxu1 }
 0x244   : > { %v528_v43 = vadd.f32 %v527_v42, %v456_v41  ;;  %v529_v44 = vpop.f32.mrb[1].mxu1 }
 0x245   : > { %v530_v45 = vadd.f32 %v529_v44, %v456_v41 }
 0x246   : > { %532 = vst [vmem:[%s312_s29] sm:$0xff] %v528_v43  ;;  %v537_v46 = vmul.f32 %v528_v43, %v528_v43 }
 0x247   : > { %533 = vst [vmem:[%s312_s29 + $0x8] sm:$0xff] %v530_v45  ;;  %v534_v47 = vadd.f32 %v530_v45, %v528_v43  ;;  %v538_v48 = vmul.f32 %v530_v45, %v530_v45 }
 0x249   : > { %535 = vadd.xlane.f32.xlu0 %v534_v47  ;;  %v539_v49 = vadd.f32 %v538_v48, %v537_v46 }
 0x24b   : > { %540 = vadd.xlane.f32.xlu1 %v539_v49 }
 0x2d6   : > { %v536_v50 = vpop.xlane.xlu0 %535 }
 0x2d8   : > { %v541_v51 = vpop.xlane.xlu1 %540 }
 0x2d9   : > { %v543_v52 = vsel %vm542_vm3, %v536_v50, %v541_v51 }
 0x2da   : > { %545 = vst.msk [vmem:[%s316_s12] sm:$0xff] %vm544_vm4, %v543_v52 }
 0x2db PF: > { %s19_s27 = sadd.s32 1, %s676_s27  }
 0x2dc   : > { %p16_p4 = scmp.ge.s32.totalorder %s19_s27, 4  }
 0x2de   :  { %18 = sbr.rel (!%p16_p4) target bundleno = 1 (0x1), region = 90 }

</bundles_post_ra>
